<compile_context>
chip_gen: v6e
topology: v6e:2x2x1
jax: 0.10.0
libtpu: 0.0.40
codegen_flags: <defaults>
</compile_context>

<pallas_src>
import jax
import jax.numpy as jnp
from jax import lax
from jax.experimental import pallas as pl
from jax.experimental.pallas import tpu as pltpu


FEAT_IN = 10  # PyTorch module input features


def _round_up(n, m):
    return (n + m - 1) // m * m


def mlp_kernel(x_ref, w1_ref, b1_ref, w2_ref, b2_ref, w3r_ref, b3_ref, o_ref):
    # Layer 1: [TB, 10] @ [10, h0] on the MXU (K=10 zero-padded internally),
    # f32 accumulation; bias + ReLU on the VPU.
    h = jnp.dot(x_ref[...], w1_ref[...], preferred_element_type=jnp.float32)
    h = jnp.maximum(h + b1_ref[...], 0.0)

    # Layer 2: [TB, h0] @ [h0, h1], f32 accumulation; bias + ReLU.
    h = jnp.dot(h, w2_ref[...], preferred_element_type=jnp.float32)
    h = jnp.maximum(h + b2_ref[...], 0.0)

    # Layer 3 (out_features == 1): attention-style contraction on the MXU,
    # [1, h1] . [TB, h1] -> [1, TB].  The batch ends up in the lane dimension, so the
    # store below is lane-dense (unmasked vst) with zero relayout work.
    y = lax.dot_general(
        w3r_ref[...], h,
        dimension_numbers=(((1,), (1,)), ((), ())),
        preferred_element_type=jnp.float32,
    )                                                   # [1, TB]
    o_ref[...] = (y + b3_ref[0, 0]).astype(o_ref.dtype)  # b3 scalar from SMEM


def _choose_tb(B, tb_max, row_align):
    """Batch tile: big enough to amortize ~0.35us/step overhead, small enough that
    mid-size batches still give v7x's two TensorCores >=3-4 grid steps, and a
    multiple of 128 whenever the grid has more than one step (keeps the lane-dense
    (1, tb) output block layout-legal)."""
    tb_max = max(128, _round_up(tb_max, 128))  # defensive: callers may pass e.g. 1000
    if B <= 1024:
        return _round_up(B, row_align)         # single grid step; blocks == full arrays
    tb = max(512, _round_up(pl.cdiv(B, 4), 128))
    return min(tb, tb_max)


def linear_regression_forward(x, params, *, tb_max=2048, cast_to_bf16=False):
    """x: [B, 10]; params: dict of weights/biases. Returns [B, 1] float32."""
    B, f_in = x.shape
    assert f_in == FEAT_IN, x.shape

    w1, b1, w2, b2, w3, b3 = (
        params["w1"], params["b1"], params["w2"],
        params["b2"], params["w3"], params["b3"],
    )
    h1 = w2.shape[1]

    # Layer-3 weight as a [1, h1] row (LHS of the lane-dense contraction); b3 scalar.
    w3_row = w3.reshape(1, h1)
    b3_s = b3.reshape(1, 1)

    if cast_to_bf16:
        # v5e (HBM-bound): halve only the x / w1 streams; w2/w3/biases stay f32 so no
        # in-kernel cast of the [TB, h] intermediates is ever generated.
        # TODO(synk): in production, cast w1 once at parameter-load time, not per call.
        x = x.astype(jnp.bfloat16)
        w1 = w1.astype(jnp.bfloat16)

    row_align = 16 if x.dtype == jnp.bfloat16 else 8
    tb = _choose_tb(B, tb_max, row_align)
    num_tiles = pl.cdiv(B, tb)

    # Weights/biases: constant index_map -> VMEM-resident, fetched once.
    resident = lambda a: pl.BlockSpec(a.shape, lambda i: (0, 0))

    out = pl.pallas_call(
        mlp_kernel,
        out_shape=jax.ShapeDtypeStruct((num_tiles, tb), jnp.float32),
        grid=(num_tiles,),
        in_specs=[
            pl.BlockSpec((tb, FEAT_IN), lambda i: (i, 0)),       # x: batch-tiled, unpadded
            resident(w1), resident(b1),
            resident(w2), resident(b2),
            resident(w3_row),
            pl.BlockSpec(memory_space=pltpu.MemorySpace.SMEM),   # b3 scalar in SMEM
        ],
        out_specs=pl.BlockSpec((1, tb), lambda i: (i, 0)),       # lane-dense output slab
        compiler_params=pltpu.CompilerParams(
            dimension_semantics=("parallel",),                   # megacore on v7x
        ),
    )(x, w1, b1, w2, b2, w3_row, b3_s)

    # Rows past B in the trailing tile are computed from unspecified pad rows and
    # discarded here; every row is independent, so they cannot contaminate valid rows.
    return out.reshape(-1)[:B].reshape(B, 1)


def init_params(key, in_features=10, hidden_layer_width=(32, 32)):
    """Mimics PyTorch Linear default init: U(-1/sqrt(fan_in), +1/sqrt(fan_in))."""
    h0, h1 = hidden_layer_width
    dims = [(in_features, h0), (h0, h1), (h1, 1)]
    params = {}
    for idx, (fan_in, fan_out) in enumerate(dims, start=1):
        key, kw, kb = jax.random.split(key, 3)
        bound = 1.0 / jnp.sqrt(jnp.float32(fan_in))
        params[f"w{idx}"] = jax.random.uniform(
            kw, (fan_in, fan_out), jnp.float32, minval=-bound, maxval=bound)
        # biases kept 2D [1, fan_out] for clean VMEM layout / broadcasting
        params[f"b{idx}"] = jax.random.uniform(
            kb, (1, fan_out), jnp.float32, minval=-bound, maxval=bound)
    return params


def reference_forward(x, params):
    h = jnp.maximum(x @ params["w1"] + params["b1"], 0.0)
    h = jnp.maximum(h @ params["w2"] + params["b2"], 0.0)
    return h @ params["w3"] + params["b3"]


if __name__ == "__main__":
    key = jax.random.PRNGKey(0)
    key, kx_small, kx_big = jax.random.split(key, 3)

    params = init_params(key, in_features=10, hidden_layer_width=(32, 32))

    # Small demo batch (single grid step; matches the module's toy usage).
    x_small = jax.random.normal(kx_small, (8, 10), dtype=jnp.float32)
    out_small = jax.block_until_ready(linear_regression_forward(x_small, params))
    ref_small = reference_forward(x_small, params)
    assert out_small.shape == (8, 1), out_small.shape
    assert jnp.allclose(out_small, ref_small, atol=1e-5, rtol=1e-5), "small-batch mismatch"

    # Batch-tiled path: multiple grid steps with a partial trailing x block.
    x_big = jax.random.normal(kx_big, (1037, 10), dtype=jnp.float32)
    out_big = jax.block_until_ready(linear_regression_forward(x_big, params))
    ref_big = reference_forward(x_big, params)
    assert out_big.shape == (1037, 1), out_big.shape
    assert jnp.allclose(out_big, ref_big, atol=1e-4, rtol=1e-4), "tiled-batch mismatch"

    print("KERNEL_OK")
</pallas_src>

<mosaic_0001>
module attributes {stable_mosaic.version = 11 : i64} {
  func.func @mlp_kernel(%arg0: i32, %arg1: memref<8x10xf32, #tpu.memory_space<vmem>>, %arg2: memref<10x32xf32, #tpu.memory_space<vmem>>, %arg3: memref<1x32xf32, #tpu.memory_space<vmem>>, %arg4: memref<32x32xf32, #tpu.memory_space<vmem>>, %arg5: memref<1x32xf32, #tpu.memory_space<vmem>>, %arg6: memref<1x32xf32, #tpu.memory_space<vmem>>, %arg7: memref<1x1xf32, #tpu.memory_space<smem>>, %arg8: memref<1x8xf32, #tpu.memory_space<vmem>>) attributes {dimension_semantics = [#tpu.dimension_semantics<parallel>], iteration_bounds = array<i64: 1>, scalar_prefetch = 0 : i64, scratch_operands = 0 : i64, tpu.core_type = #tpu.core_type<tc>, window_params = [{transform_indices = @transform_0, window_bounds = array<i64: 8, 10>}, {pipeline_mode = #tpu.pipeline_mode<synchronous>, transform_indices = @transform_1, window_bounds = array<i64: 10, 32>}, {pipeline_mode = #tpu.pipeline_mode<synchronous>, transform_indices = @transform_2, window_bounds = array<i64: 1, 32>}, {pipeline_mode = #tpu.pipeline_mode<synchronous>, transform_indices = @transform_3, window_bounds = array<i64: 32, 32>}, {pipeline_mode = #tpu.pipeline_mode<synchronous>, transform_indices = @transform_4, window_bounds = array<i64: 1, 32>}, {pipeline_mode = #tpu.pipeline_mode<synchronous>, transform_indices = @transform_5, window_bounds = array<i64: 1, 32>}, {transform_indices = @transform_6, window_bounds = array<i64: 1, 1>}, {transform_indices = @transform_7, window_bounds = array<i64: 1, 8>}]} {
    %c0 = arith.constant 0 : index
    %c0_0 = arith.constant 0 : index
    %0 = vector.load %arg1[%c0, %c0_0] : memref<8x10xf32, #tpu.memory_space<vmem>>, vector<8x10xf32>
    %c0_1 = arith.constant 0 : index
    %c0_2 = arith.constant 0 : index
    %1 = vector.load %arg2[%c0_1, %c0_2] : memref<10x32xf32, #tpu.memory_space<vmem>>, vector<10x32xf32>
    %cst = arith.constant dense<0.000000e+00> : vector<8x32xf32>
    %2 = tpu.matmul %0, %1, %cst {dimension_numbers = #tpu.dot_dimension_numbers<[1], [0], [0], [1], [0, 0, 1, 1], [], []>} : vector<8x10xf32>, vector<10x32xf32>, vector<8x32xf32> -> vector<8x32xf32>
    %c0_3 = arith.constant 0 : index
    %c0_4 = arith.constant 0 : index
    %3 = vector.load %arg3[%c0_3, %c0_4] : memref<1x32xf32, #tpu.memory_space<vmem>>, vector<1x32xf32>
    %4 = vector.broadcast %3 : vector<1x32xf32> to vector<8x32xf32>
    %5 = arith.addf %2, %4 : vector<8x32xf32>
    %cst_5 = arith.constant 0.000000e+00 : f32
    %6 = vector.broadcast %cst_5 : f32 to vector<8x32xf32>
    %7 = arith.maximumf %5, %6 : vector<8x32xf32>
    %c0_6 = arith.constant 0 : index
    %c0_7 = arith.constant 0 : index
    %8 = vector.load %arg4[%c0_6, %c0_7] : memref<32x32xf32, #tpu.memory_space<vmem>>, vector<32x32xf32>
    %cst_8 = arith.constant dense<0.000000e+00> : vector<8x32xf32>
    %9 = tpu.matmul %7, %8, %cst_8 {dimension_numbers = #tpu.dot_dimension_numbers<[1], [0], [0], [1], [0, 0, 1, 1], [], []>} : vector<8x32xf32>, vector<32x32xf32>, vector<8x32xf32> -> vector<8x32xf32>
    %c0_9 = arith.constant 0 : index
    %c0_10 = arith.constant 0 : index
    %10 = vector.load %arg5[%c0_9, %c0_10] : memref<1x32xf32, #tpu.memory_space<vmem>>, vector<1x32xf32>
    %11 = vector.broadcast %10 : vector<1x32xf32> to vector<8x32xf32>
    %12 = arith.addf %9, %11 : vector<8x32xf32>
    %cst_11 = arith.constant 0.000000e+00 : f32
    %13 = vector.broadcast %cst_11 : f32 to vector<8x32xf32>
    %14 = arith.maximumf %12, %13 : vector<8x32xf32>
    %c0_12 = arith.constant 0 : index
    %c0_13 = arith.constant 0 : index
    %15 = vector.load %arg6[%c0_12, %c0_13] : memref<1x32xf32, #tpu.memory_space<vmem>>, vector<1x32xf32>
    %cst_14 = arith.constant dense<0.000000e+00> : vector<1x8xf32>
    %16 = tpu.matmul %15, %14, %cst_14 {dimension_numbers = #tpu.dot_dimension_numbers<[1], [1], [0], [0], [0, 0, 1, 0], [], []>} : vector<1x32xf32>, vector<8x32xf32>, vector<1x8xf32> -> vector<1x8xf32>
    %c0_15 = arith.constant 0 : index
    %c0_16 = arith.constant 0 : index
    %17 = memref.load %arg7[%c0_15, %c0_16] : memref<1x1xf32, #tpu.memory_space<smem>>
    %18 = vector.broadcast %17 : f32 to vector<1x8xf32>
    %19 = arith.addf %16, %18 : vector<1x8xf32>
    %c0_17 = arith.constant 0 : index
    %c0_18 = arith.constant 0 : index
    %20 = vector.load %arg8[%c0_17, %c0_18] : memref<1x8xf32, #tpu.memory_space<vmem>>, vector<1x8xf32>
    tpu.vector_store %arg8[%c0_17, %c0_18], %19 {strides = array<i32>} : memref<1x8xf32, #tpu.memory_space<vmem>>, vector<1x8xf32>,
    return
  }
  func.func @transform_0(%arg0: i32) -> (i32, i32) {
    %c0_i32 = arith.constant 0 : i32
    %c0_i32_0 = arith.constant 0 : i32
    return %arg0, %c0_i32 : i32, i32
  }
  func.func @transform_1(%arg0: i32) -> (i32, i32) {
    %c0_i32 = arith.constant 0 : i32
    %c0_i32_0 = arith.constant 0 : i32
    %c0_i32_1 = arith.constant 0 : i32
    return %c0_i32, %c0_i32_0 : i32, i32
  }
  func.func @transform_2(%arg0: i32) -> (i32, i32) {
    %c0_i32 = arith.constant 0 : i32
    %c0_i32_0 = arith.constant 0 : i32
    %c0_i32_1 = arith.constant 0 : i32
    return %c0_i32, %c0_i32_0 : i32, i32
  }
  func.func @transform_3(%arg0: i32) -> (i32, i32) {
    %c0_i32 = arith.constant 0 : i32
    %c0_i32_0 = arith.constant 0 : i32
    %c0_i32_1 = arith.constant 0 : i32
    return %c0_i32, %c0_i32_0 : i32, i32
  }
  func.func @transform_4(%arg0: i32) -> (i32, i32) {
    %c0_i32 = arith.constant 0 : i32
    %c0_i32_0 = arith.constant 0 : i32
    %c0_i32_1 = arith.constant 0 : i32
    return %c0_i32, %c0_i32_0 : i32, i32
  }
  func.func @transform_5(%arg0: i32) -> (i32, i32) {
    %c0_i32 = arith.constant 0 : i32
    %c0_i32_0 = arith.constant 0 : i32
    %c0_i32_1 = arith.constant 0 : i32
    return %c0_i32, %c0_i32_0 : i32, i32
  }
  func.func @transform_6(%arg0: i32) -> (i32, i32) {
    %c0_i32 = arith.constant 0 : i32
    %c0_i32_0 = arith.constant 0 : i32
    %c0_i32_1 = arith.constant 0 : i32
    return %c0_i32, %c0_i32_0 : i32, i32
  }
  func.func @transform_7(%arg0: i32) -> (i32, i32) {
    %c0_i32 = arith.constant 0 : i32
    %c0_i32_0 = arith.constant 0 : i32
    return %arg0, %c0_i32 : i32, i32
  }
}

</mosaic_0001>

<bundles_post_ra>
// kernel: tpu_custom_call.1
= control target key start
LH: loop header
LB: loop body
LE: loop exit
PB: predicated region body
PF: predicated region fallthrough
CT: control target
= control target key end

     0   :  { %13 = vsyncpa [#allocation4], 0  ;;  %s548_s0 = inlined_call_operand.hbm [shape: f32[8,10], index: 0, kind: input, shape index: {}]   ;;  %s549_s1 = inlined_call_operand.hbm [shape: f32[10,32], index: 1, kind: input, shape index: {}]   ;;  %s550_s2 = inlined_call_operand.vmem [shape: f32[1,32], index: 2, kind: input, shape index: {}]   ;;  %s551_s3 = inlined_call_operand.hbm [shape: f32[32,32], index: 3, kind: input, shape index: {}]   ;;  %s552_s4 = inlined_call_operand.vmem [shape: f32[1,32], index: 4, kind: input, shape index: {}]   ;;  %s553_s5 = inlined_call_operand.vmem [shape: f32[1,32], index: 5, kind: input, shape index: {}]   ;;  %s554_s6 = inlined_call_operand.<no memory space> [shape: f32[1,1], index: 6, kind: input, shape index: {}]   ;;  %s555_s7 = inlined_call_operand.hbm [shape: f32[1,8], index: 7, kind: output, shape index: {}]  }
   0x1   :  { %14 = vsyncpa [#allocation7], 0 }
   0x2   :  { %15 = vsyncpa [#allocation5], 0  ;;  %s473_s24 = smov [#allocation6]  }
   0x3   :  { %s31_s25 = sshll.u32 %s473_s24, 4  ;;  %s32_s25 = int_to_ptr.vmem [resolvable:$true] %s31_s25 }
   0x4   :  { %s395_s26 = scalar_lea.vmem %s32_s25, 256  ;;  %p400_p1 = scmp.lt.s32.totalorder %s32_s25, %s32_s25 }
   0x5   :  { %p396_p0 = scmp.ne.s32.totalorder %s32_s25, %s395_s26  ;;  %p401_p2 = scmp.lt.s32.totalorder %s395_s26, %s395_s26 }
   0x7   :  { %p402_p3 = por %p401_p2, %p400_p1 }
   0x9   :  { %p403_p4 = pnand %p402_p3, %p396_p0 }
   0xb   :  { %406 = shalt.err (!%p403_p4)
}
   0xc   :  { %s474_s27 = smov 128   ;;  %s475_s28 = smov 8  }
   0xd   :  { %37 = dma.hbm_to_vmem [thread:$0]  %s549_s1, 256, %s32_s25, [#allocation7], %s474_s27, %s474_s27, %s475_s28  }
   0xe   :  { %s476_s8 = smov [#allocation3]   ;;  %s477_s10 = smov [#allocation8]  }
   0xf   :  { %s22_s9 = sshll.u32 %s476_s8, 4  ;;  %s45_s11 = sshll.u32 %s477_s10, 4  ;;  %s23_s9 = int_to_ptr.vmem [resolvable:$true] %s22_s9  ;;  %s46_s11 = int_to_ptr.vmem [resolvable:$true] %s45_s11 }
  0x10   :  { %s415_s12 = scalar_lea.vmem %s23_s9, 128  ;;  %p420_p6 = scmp.lt.s32.totalorder %s23_s9, %s23_s9 }
  0x11   :  { %p416_p5 = scmp.ne.s32.totalorder %s23_s9, %s415_s12  ;;  %p421_p7 = scmp.lt.s32.totalorder %s415_s12, %s415_s12 }
  0x13   :  { %p422_p8 = por %p421_p7, %p420_p6 }
  0x15   :  { %p423_p9 = pnand %p422_p8, %p416_p5 }
  0x17   :  { %426 = shalt.err (!%p423_p9)
}
  0x18   :  { %25 = dma.hbm_to_vmem [thread:$0]  %s548_s0, 128, %s23_s9, [#allocation4]  }
  0x19   :  { %s435_s15 = scalar_lea.vmem %s46_s11, 512  ;;  %p440_p11 = scmp.lt.s32.totalorder %s46_s11, %s46_s11 }
  0x1a   :  { %p436_p10 = scmp.ne.s32.totalorder %s46_s11, %s435_s15  ;;  %p441_p12 = scmp.lt.s32.totalorder %s435_s15, %s435_s15 }
  0x1c   :  { %p442_p13 = por %p441_p12, %p440_p11 }
  0x1e   :  { %p443_p0 = pnand %p442_p13, %p436_p10 }
  0x20   :  { %446 = shalt.err (!%p443_p0)
}
  0x21   :  { %51 = dma.hbm_to_vmem [thread:$0]  %s551_s3, 512, %s46_s11, [#allocation7], %s474_s27, %s474_s27, %s475_s28  }
  0x22   :  { %467 = dma.done.wait [#allocation4], 128  }
  0x23   :  { %468 = vsyncadd [#allocation4], 4294967168 }
  0x24   :  { %469 = dma.done.wait [#allocation7], 768  }
  0x25   :  { %470 = vsyncadd [#allocation7], 4294966528  ;;  %v478_v0 = vmov 0.0   ;;  %vm479_vm0 = vmmov 0   ;;  %vm81_vm1 = vcmask 1041408   ;;  %v68_v2 = vld [vmem:[#allocation6] sm:$0xff]  ;;  %v244_v19 = vstv %s554_s6 }
  0x26   :  { %356 = vmatprep.subr.mxu0 %v478_v0  ;;  %360 = vmatprep.mubr.msk.f32.mxu0 %vm479_vm0, %v478_v0  ;;  %v69_v1 = vld [vmem:[#allocation6 + $0x8] sm:$0x3]  ;;  %v67_v3 = vld [vmem:[#allocation3] sm:$0xff]  ;;  %vm77_vm2 = vcmask 80896   ;;  %v158_v5 = vld [vmem:[#allocation8 + $0x10] sm:$0xff]  ;;  %vm167_vm3 = vcmask 261120  }
  0x27   :  { %363 = vmatprep.subr.mxu1 %v478_v0  ;;  %371 = vmatprep.mubr.msk.f32.mxu1 %vm479_vm0, %v478_v0  ;;  %v159_v4 = vld [vmem:[#allocation8 + $0x18] sm:$0xff]  ;;  %v157_v6 = vld [vmem:[#allocation8 + $0x8] sm:$0xff]  ;;  %v156_v7 = vld [vmem:[#allocation8] sm:$0xff]  ;;  %s480_s22 = smov [#allocation9]   ;;  %vm321_vm4 = vcmask 57344  }
  0x28   :  { %357 = vmatpush3.msk.msra.mxu0 %vm81_vm1, %v69_v1  ;;  %364 = vmatpush3.msra.mxu1 %v159_v4  ;;  %v339_v8 = vld [vmem:[%s550_s2] ss:$0 sm:$0xff]  ;;  %s329_s23 = sshll.u32 %s480_s22, 4  ;;  %s330_s23 = int_to_ptr.vmem [resolvable:$true] %s329_s23 }
  0x29   :  { %358 = vmatprep.subr.mxu0 %v478_v0  ;;  %365 = vmatprep.subr.mxu1 %v478_v0  ;;  %v342_v13 = vld [vmem:[%s552_s4] ss:$0 sm:$0xff]  ;;  %s447_s4 = scalar_lea.vmem %s330_s23, 16  ;;  %s451_s24 = scalar_lea.vmem %s330_s23, 32 }
  0x2a   :  { %359 = vmatpush3.msra.mxu0 %v68_v2  ;;  %366 = vmatpush3.msra.mxu1 %v158_v5  ;;  %v242_v18 = vld [vmem:[%s553_s5] sm:$0x1]  ;;  %p448_p1 = scmp.ne.s32.totalorder %s330_s23, %s447_s4  ;;  %p452_p2 = scmp.lt.s32.totalorder %s330_s23, %s330_s23 }
  0x2b   :  { %361 = vmatmul.mubr.msk.f32.vlgmr.msra.gmra.mxu0 %vm77_vm2, %v67_v3  ;;  %374 = vmatprep.subr.mxu0 %v478_v0  ;;  %p453_p3 = scmp.lt.s32.totalorder %s451_s24, %s447_s4 }
  0x2c   :  { %376 = vmatprep.mubr.msk.f32.mxu0 %vm479_vm0, %v478_v0  ;;  %367 = vmatprep.subr.mxu1 %v478_v0 }
  0x2d   :  { %368 = vmatpush3.msra.mxu1 %v157_v6  ;;  %p454_p4 = por %p453_p3, %p452_p2 }
  0x2e   :  { %369 = vmatprep.subr.mxu1 %v478_v0 }
  0x2f   :  { %370 = vmatpush3.msra.mxu1 %v156_v7  ;;  %p455_p5 = pnand %p454_p4, %p448_p1 }
  0xeb   :  { %v151_v9 = vpop.f32.mrf.mxu0 }
  0xec   :  { %v152_v10 = vadd.f32 %v339_v8, %v151_v9 }
  0xed   :  { %v362_v11 = vpop.f32.mrf.mxu0 }
  0xee   :  { %v155_v12 = vmax.f32 %v152_v10, 0.0 }
  0xf0   :  { %372 = vmatmul.mubr.msk.f32.vlgmr.msra.gmra.mxu1 %vm167_vm3, %v155_v12 }
 0x1b0   :  { %v237_v14 = vpop.f32.mrf.mxu1 }
 0x1b1   :  { %v238_v15 = vadd.f32 %v342_v13, %v237_v14 }
 0x1b2   :  { %v373_v16 = vpop.f32.mrf.mxu1 }
 0x1b3   :  { %v241_v17 = vmax.f32 %v238_v15, 0.0 }
 0x1b5   :  { %375 = vmatpush3.xpose.msk.msra.mxu0 %vm167_vm3, %v241_v17 }
 0x1b8   :  { %377 = vmatmul.mubr.msk.f32.vlgmr.msra.gmra.mxu0 %vm167_vm3, %v242_v18 }
 0x278   :  { %v317_v20 = vpop.f32.mrf.mxu0 }
 0x279   :  { %v318_v21 = vadd.f32 %v317_v20, %v244_v19 }
 0x27a   :  { %v378_v22 = vpop.f32.mrf.mxu0 }
 0x27b   :  { %322 = vst.msk [vmem:[#allocation9] sm:$0x1] %vm321_vm4, %v318_v21 }
 0x27c   :  { %458 = shalt.err (!%p455_p5)
}
 0x27d   :  { %332 = dma.vmem_to_hbm [thread:$0]  %s330_s23, 16, %s555_s7, [#allocation5]  }
 0x27e   :  { %471 = dma.done.wait [#allocation5], 16  }
 0x27f   :  { %472 = vsyncadd [#allocation5], 4294967280 }
 0x280   :  { %336 = vsyncpa [#allocation4], 1 }
 0x281   :  { %337 = vsyncpa [#allocation7], 1 }
 0x282   :  { %338 = vsyncpa [#allocation5], 1 }

</bundles_post_ra>
